<compile_context>
chip_gen: v7x
topology: tpu7x:2x2x1
jax: 0.10.0
libtpu: 0.0.40
codegen_flags: <defaults>
</compile_context>

<pallas_src>
import functools

import jax
import jax.numpy as jnp
from jax import lax
from jax.experimental import pallas as pl
from jax.experimental.pallas import tpu as pltpu


def _round_up(x: int, m: int) -> int:
    return ((x + m - 1) // m) * m


def code_vectorizer_kernel(s_ref, p_ref, e_ref, ws_ref, wp_ref, we_ref,
                           wa_ref, out_ref, *, n_ctx, n_ctx_pad):
    # s_ref/p_ref/e_ref : (TB*C_pad, D) bf16  gathered start/path/end embeddings
    # ws/wp/we          : (D, Dp)       bf16  per-segment transform weights
    # wa_ref            : (1, Dp)       f32   attention weight (padded cols = 0)
    # out_ref           : (TB, Dp)      f32   aggregated context vectors
    TB, Dp = out_ref.shape

    # Three K=D matmuls back to back, accumulating in f32 (chained accumulation
    # sits in the MRB on v7x; on v5e K=D already fills the 128-wide MXU).
    acc = jnp.dot(s_ref[...], ws_ref[...], preferred_element_type=jnp.float32)
    acc = acc + jnp.dot(p_ref[...], wp_ref[...], preferred_element_type=jnp.float32)
    acc = acc + jnp.dot(e_ref[...], we_ref[...], preferred_element_type=jnp.float32)
    t = jnp.tanh(acc)                                   # (TB*C_pad, Dp) f32

    # Split rows back into (TB, C_pad, Dp); layout preserving since C_pad % 8 == 0.
    t3 = t.reshape(TB, n_ctx_pad, Dp)

    # Attention logits, kept in the (TB, C_pad, 1) layout so every later
    # broadcast back over the Dp lane axis is free.  The Linear(dim,1) bias is
    # dropped: it is constant across contexts and cancels in the softmax.
    logits = jnp.sum(t3 * wa_ref[...], axis=-1, keepdims=True)   # (TB, C_pad, 1)
    if n_ctx_pad != n_ctx:
        ctx = lax.broadcasted_iota(jnp.int32, (TB, n_ctx_pad, 1), 1)
        logits = jnp.where(ctx < n_ctx, logits, -1e30)           # mask padded ctx

    # Softmax over the context axis.
    m = jnp.max(logits, axis=1, keepdims=True)                   # (TB, 1, 1)
    ex = jnp.exp(logits - m)                                     # (TB, C_pad, 1)
    inv = pl.reciprocal(jnp.sum(ex, axis=1, keepdims=True), approx=True)
    attn = ex * inv                                              # (TB, C_pad, 1)

    # Weighted sum over contexts: VPU multiply + context-axis reduction
    # (replaces the previous M=1 batched einsum -> no tiny MXU pushes).
    out_ref[...] = jnp.sum(t3 * attn, axis=1)                    # (TB, Dp) f32


def prepare_params(params):
    """One-time parameter prep (outside the hot path): bf16 embedding tables so
    the gather reads half the bytes, transform weight split into per-segment
    (D, Dp) slabs with the output dim padded to a lane multiple of 128."""
    wt = params["transform_w"]                 # (3*D, D)
    D = wt.shape[1]
    Dp = _round_up(D, 128)

    def prep_w(w):
        return jnp.pad(w, ((0, 0), (0, Dp - D))).astype(jnp.bfloat16)

    return {
        "tokens_embed": params["tokens_embed"].astype(jnp.bfloat16),
        "paths_embed": params["paths_embed"].astype(jnp.bfloat16),
        "ws": prep_w(wt[:D]),
        "wp": prep_w(wt[D:2 * D]),
        "we": prep_w(wt[2 * D:]),
        "wa": jnp.pad(params["attn_w"], ((0, 0), (0, Dp - D))).astype(jnp.float32),
        # attn_b intentionally dropped: it cancels inside the softmax.
    }


def code_vectorizer_forward(starts, paths, ends, prep):
    """Forward pass (eval mode). Embedding gathers are XLA glue straight from
    bf16 tables; transform + attention + softmax + aggregation run in Pallas."""
    ws, wp, we, wa = prep["ws"], prep["wp"], prep["we"], prep["wa"]
    D, Dp = ws.shape
    B, C = starts.shape

    # Gather directly from bf16 tables (halves gather HBM read vs f32 + cast).
    s = jnp.take(prep["tokens_embed"], starts, axis=0)   # (B, C, D) bf16
    p = jnp.take(prep["paths_embed"], paths, axis=0)
    e = jnp.take(prep["tokens_embed"], ends, axis=0)
    # nn.Dropout(p=0.2) is identity at inference time.

    # Pad the context axis to a multiple of 8 so the in-kernel
    # (rows, Dp) -> (TB, C_pad, Dp) split is layout preserving; padded contexts
    # are masked out of the softmax inside the kernel.
    C_pad = _round_up(C, 8)
    if C_pad != C:
        padc = ((0, 0), (0, C_pad - C), (0, 0))
        s, p, e = jnp.pad(s, padc), jnp.pad(p, padc), jnp.pad(e, padc)

    # Batch blocking: each grid step should move >= ~1.5 MiB of input to
    # amortize per-step pipeline overhead; TB is a multiple of 8 (clean sublane
    # tiling of the (TB, Dp) output block), and when the batch is big enough we
    # keep >= 2 blocks so v7x's two TensorCores both get work.
    target_rows = 2048
    tb_cap = max(8, (target_rows // C_pad) // 8 * 8)
    B8 = _round_up(B, 8)
    TB = min(tb_cap, B8)
    if B8 > 8:
        TB = min(TB, _round_up(pl.cdiv(B8, 2), 8))       # keep >= 2 grid blocks
    n_blocks = pl.cdiv(B, TB)
    B_pad = n_blocks * TB
    if B_pad != B:
        padb = ((0, B_pad - B), (0, 0), (0, 0))
        s, p, e = jnp.pad(s, padb), jnp.pad(p, padb), jnp.pad(e, padb)

    # Flatten to 2-D at the pallas_call boundary (free HBM-level reshape) so
    # the kernel's MXU operands arrive already merged.
    R = TB * C_pad
    s2 = s.reshape(B_pad * C_pad, D)
    p2 = p.reshape(B_pad * C_pad, D)
    e2 = e.reshape(B_pad * C_pad, D)

    kernel = functools.partial(code_vectorizer_kernel, n_ctx=C, n_ctx_pad=C_pad)

    out = pl.pallas_call(
        kernel,
        out_shape=jax.ShapeDtypeStruct((B_pad, Dp), jnp.float32),
        grid_spec=pltpu.PrefetchScalarGridSpec(
            num_scalar_prefetch=0,
            grid=(n_blocks,),
            in_specs=[
                # NOTE: if profiling shows exposed DMA latency, try
                # pipeline_mode=pl.Buffered(3) on these three specs.
                pl.BlockSpec((R, D), lambda b: (b, 0)),
                pl.BlockSpec((R, D), lambda b: (b, 0)),
                pl.BlockSpec((R, D), lambda b: (b, 0)),
                pl.BlockSpec((D, Dp), lambda b: (0, 0)),
                pl.BlockSpec((D, Dp), lambda b: (0, 0)),
                pl.BlockSpec((D, Dp), lambda b: (0, 0)),
                pl.BlockSpec((1, Dp), lambda b: (0, 0)),
            ],
            out_specs=pl.BlockSpec((TB, Dp), lambda b: (b, 0)),
        ),
        compiler_params=pltpu.CompilerParams(
            dimension_semantics=("parallel",),       # shards blocks across v7x TCs
            vmem_limit_bytes=32 * 1024 * 1024,       # safe on v5e/v6e/v7x
        ),
    )(s2, p2, e2, ws, wp, we, wa)

    return out[:B, :D]


def reference_forward(starts, paths, ends, params):
    """Pure-JAX f32 reference mirroring the PyTorch forward (eval mode)."""
    tok_emb = params["tokens_embed"]
    s = jnp.take(tok_emb, starts, axis=0)
    p = jnp.take(params["paths_embed"], paths, axis=0)
    e = jnp.take(tok_emb, ends, axis=0)
    x = jnp.concatenate([s, p, e], axis=2)
    t = jnp.tanh(x @ params["transform_w"])                        # (B, C, dim)
    logits = (jnp.sum(t * params["attn_w"][0], axis=-1, keepdims=True)
              + params["attn_b"][0, 0])
    attn = jax.nn.softmax(logits, axis=1)                          # (B, C, 1)
    return jnp.sum(t * attn, axis=1)                               # (B, dim)


def init_params(key, n_tokens, n_paths, dim):
    k1, k2, k3, k4, k5 = jax.random.split(key, 5)
    return {
        # nn.Embedding default init: N(0, 1)
        "tokens_embed": jax.random.normal(k1, (n_tokens, dim), jnp.float32),
        "paths_embed": jax.random.normal(k2, (n_paths, dim), jnp.float32),
        # nn.Linear(3*dim, dim, bias=False): stored transposed as (3*dim, dim)
        "transform_w": jax.random.uniform(
            k3, (3 * dim, dim), jnp.float32, -1.0, 1.0
        ) * (1.0 / jnp.sqrt(3.0 * dim)),
        # nn.Linear(dim, 1): weight stored as (1, dim), bias as (1, 1)
        "attn_w": jax.random.uniform(
            k4, (1, dim), jnp.float32, -1.0, 1.0
        ) * (1.0 / jnp.sqrt(dim)),
        "attn_b": jax.random.uniform(
            k5, (1, 1), jnp.float32, -1.0, 1.0
        ) * (1.0 / jnp.sqrt(dim)),
    }


if __name__ == "__main__":
    n_tokens, n_paths, dim = 50, 60, 32
    B, C = 4, 8  # batch size, number of path-contexts per sample

    key = jax.random.PRNGKey(0)
    kp, ks, kq, ke = jax.random.split(key, 4)

    params = init_params(kp, n_tokens, n_paths, dim)
    prep = prepare_params(params)      # one-time: bf16 tables, split/padded weights

    starts = jax.random.randint(ks, (B, C), 0, n_tokens, dtype=jnp.int32)
    paths = jax.random.randint(kq, (B, C), 0, n_paths, dtype=jnp.int32)
    ends = jax.random.randint(ke, (B, C), 0, n_tokens, dtype=jnp.int32)

    fwd = jax.jit(code_vectorizer_forward)
    out = jax.block_until_ready(fwd(starts, paths, ends, prep))
    ref = jax.block_until_ready(reference_forward(starts, paths, ends, params))

    assert out.shape == (B, dim), out.shape
    # bf16 matmul operands + approx reciprocal -> looser tolerance than f32 ref.
    max_err = jnp.max(jnp.abs(out - ref))
    assert max_err < 2e-2, f"max abs err {max_err}"
    print("KERNEL_OK")
</pallas_src>

<mosaic_0001>
module attributes {stable_mosaic.version = 11 : i64} {
  func.func @code_vectorizer_kernel(%arg0: i32, %arg1: memref<64x32xbf16, #tpu.memory_space<vmem>>, %arg2: memref<64x32xbf16, #tpu.memory_space<vmem>>, %arg3: memref<64x32xbf16, #tpu.memory_space<vmem>>, %arg4: memref<32x128xbf16, #tpu.memory_space<vmem>>, %arg5: memref<32x128xbf16, #tpu.memory_space<vmem>>, %arg6: memref<32x128xbf16, #tpu.memory_space<vmem>>, %arg7: memref<1x128xf32, #tpu.memory_space<vmem>>, %arg8: memref<8x128xf32, #tpu.memory_space<vmem>>) attributes {dimension_semantics = [#tpu.dimension_semantics<parallel>], iteration_bounds = array<i64: 1>, scalar_prefetch = 0 : i64, scratch_operands = 0 : i64, tpu.core_type = #tpu.core_type<tc>, window_params = [{transform_indices = @transform_0, window_bounds = array<i64: 64, 32>}, {transform_indices = @transform_1, window_bounds = array<i64: 64, 32>}, {transform_indices = @transform_2, window_bounds = array<i64: 64, 32>}, {pipeline_mode = #tpu.pipeline_mode<synchronous>, transform_indices = @transform_3, window_bounds = array<i64: 32, 128>}, {pipeline_mode = #tpu.pipeline_mode<synchronous>, transform_indices = @transform_4, window_bounds = array<i64: 32, 128>}, {pipeline_mode = #tpu.pipeline_mode<synchronous>, transform_indices = @transform_5, window_bounds = array<i64: 32, 128>}, {pipeline_mode = #tpu.pipeline_mode<synchronous>, transform_indices = @transform_6, window_bounds = array<i64: 1, 128>}, {transform_indices = @transform_7, window_bounds = array<i64: 8, 128>}]} {
    %c0 = arith.constant 0 : index
    %c0_0 = arith.constant 0 : index
    %0 = vector.load %arg1[%c0, %c0_0] : memref<64x32xbf16, #tpu.memory_space<vmem>>, vector<64x32xbf16>
    %c0_1 = arith.constant 0 : index
    %c0_2 = arith.constant 0 : index
    %1 = vector.load %arg4[%c0_1, %c0_2] : memref<32x128xbf16, #tpu.memory_space<vmem>>, vector<32x128xbf16>
    %cst = arith.constant dense<0.000000e+00> : vector<64x128xf32>
    %2 = tpu.matmul %0, %1, %cst {dimension_numbers = #tpu.dot_dimension_numbers<[1], [0], [0], [1], [0, 0, 1, 1], [], []>} : vector<64x32xbf16>, vector<32x128xbf16>, vector<64x128xf32> -> vector<64x128xf32>
    %c0_3 = arith.constant 0 : index
    %c0_4 = arith.constant 0 : index
    %3 = vector.load %arg2[%c0_3, %c0_4] : memref<64x32xbf16, #tpu.memory_space<vmem>>, vector<64x32xbf16>
    %c0_5 = arith.constant 0 : index
    %c0_6 = arith.constant 0 : index
    %4 = vector.load %arg5[%c0_5, %c0_6] : memref<32x128xbf16, #tpu.memory_space<vmem>>, vector<32x128xbf16>
    %cst_7 = arith.constant dense<0.000000e+00> : vector<64x128xf32>
    %5 = tpu.matmul %3, %4, %cst_7 {dimension_numbers = #tpu.dot_dimension_numbers<[1], [0], [0], [1], [0, 0, 1, 1], [], []>} : vector<64x32xbf16>, vector<32x128xbf16>, vector<64x128xf32> -> vector<64x128xf32>
    %6 = arith.addf %2, %5 : vector<64x128xf32>
    %c0_8 = arith.constant 0 : index
    %c0_9 = arith.constant 0 : index
    %7 = vector.load %arg3[%c0_8, %c0_9] : memref<64x32xbf16, #tpu.memory_space<vmem>>, vector<64x32xbf16>
    %c0_10 = arith.constant 0 : index
    %c0_11 = arith.constant 0 : index
    %8 = vector.load %arg6[%c0_10, %c0_11] : memref<32x128xbf16, #tpu.memory_space<vmem>>, vector<32x128xbf16>
    %cst_12 = arith.constant dense<0.000000e+00> : vector<64x128xf32>
    %9 = tpu.matmul %7, %8, %cst_12 {dimension_numbers = #tpu.dot_dimension_numbers<[1], [0], [0], [1], [0, 0, 1, 1], [], []>} : vector<64x32xbf16>, vector<32x128xbf16>, vector<64x128xf32> -> vector<64x128xf32>
    %10 = arith.addf %6, %9 : vector<64x128xf32>
    %11 = math.tanh %10 : vector<64x128xf32>
    %12 = vector.shape_cast %11 : vector<64x128xf32> to vector<8x8x128xf32>
    %c0_13 = arith.constant 0 : index
    %c0_14 = arith.constant 0 : index
    %13 = vector.load %arg7[%c0_13, %c0_14] : memref<1x128xf32, #tpu.memory_space<vmem>>, vector<1x128xf32>
    %14 = vector.shape_cast %13 : vector<1x128xf32> to vector<1x1x128xf32>
    %15 = vector.broadcast %14 : vector<1x1x128xf32> to vector<8x8x128xf32>
    %16 = arith.mulf %12, %15 : vector<8x8x128xf32>
    %cst_15 = arith.constant dense<0.000000e+00> : vector<8x8xf32>
    %17 = vector.multi_reduction <add>, %16, %cst_15 [2] : vector<8x8x128xf32> to vector<8x8xf32>
    %18 = vector.shape_cast %17 : vector<8x8xf32> to vector<8x8x1xf32>
    %cst_16 = arith.constant dense<0xFF800000> : vector<8x1xf32>
    %19 = vector.multi_reduction <maximumf>, %18, %cst_16 [1] : vector<8x8x1xf32> to vector<8x1xf32>
    %20 = vector.shape_cast %19 : vector<8x1xf32> to vector<8x1x1xf32>
    %21 = vector.broadcast %20 : vector<8x1x1xf32> to vector<8x8x1xf32>
    %22 = arith.subf %18, %21 : vector<8x8x1xf32>
    %23 = math.exp %22 : vector<8x8x1xf32>
    %cst_17 = arith.constant dense<0.000000e+00> : vector<8x1xf32>
    %24 = vector.multi_reduction <add>, %23, %cst_17 [1] : vector<8x8x1xf32> to vector<8x1xf32>
    %25 = vector.shape_cast %24 : vector<8x1xf32> to vector<8x1x1xf32>
    %26 = tpu.reciprocal %25 {approx = true} : vector<8x1x1xf32> -> vector<8x1x1xf32>
    %27 = vector.broadcast %26 : vector<8x1x1xf32> to vector<8x8x1xf32>
    %28 = arith.mulf %23, %27 : vector<8x8x1xf32>
    %29 = vector.broadcast %28 : vector<8x8x1xf32> to vector<8x8x128xf32>
    %30 = arith.mulf %12, %29 : vector<8x8x128xf32>
    %cst_18 = arith.constant dense<0.000000e+00> : vector<8x128xf32>
    %31 = vector.multi_reduction <add>, %30, %cst_18 [1] : vector<8x8x128xf32> to vector<8x128xf32>
    %c0_19 = arith.constant 0 : index
    %c0_20 = arith.constant 0 : index
    %32 = vector.load %arg8[%c0_19, %c0_20] : memref<8x128xf32, #tpu.memory_space<vmem>>, vector<8x128xf32>
    tpu.vector_store %arg8[%c0_19, %c0_20], %31 {strides = array<i32>} : memref<8x128xf32, #tpu.memory_space<vmem>>, vector<8x128xf32>,
    return
  }
  func.func @transform_0(%arg0: i32) -> (i32, i32) {
    %c0_i32 = arith.constant 0 : i32
    %c0_i32_0 = arith.constant 0 : i32
    return %arg0, %c0_i32 : i32, i32
  }
  func.func @transform_1(%arg0: i32) -> (i32, i32) {
    %c0_i32 = arith.constant 0 : i32
    %c0_i32_0 = arith.constant 0 : i32
    return %arg0, %c0_i32 : i32, i32
  }
  func.func @transform_2(%arg0: i32) -> (i32, i32) {
    %c0_i32 = arith.constant 0 : i32
    %c0_i32_0 = arith.constant 0 : i32
    return %arg0, %c0_i32 : i32, i32
  }
  func.func @transform_3(%arg0: i32) -> (i32, i32) {
    %c0_i32 = arith.constant 0 : i32
    %c0_i32_0 = arith.constant 0 : i32
    %c0_i32_1 = arith.constant 0 : i32
    return %c0_i32, %c0_i32_0 : i32, i32
  }
  func.func @transform_4(%arg0: i32) -> (i32, i32) {
    %c0_i32 = arith.constant 0 : i32
    %c0_i32_0 = arith.constant 0 : i32
    %c0_i32_1 = arith.constant 0 : i32
    return %c0_i32, %c0_i32_0 : i32, i32
  }
  func.func @transform_5(%arg0: i32) -> (i32, i32) {
    %c0_i32 = arith.constant 0 : i32
    %c0_i32_0 = arith.constant 0 : i32
    %c0_i32_1 = arith.constant 0 : i32
    return %c0_i32, %c0_i32_0 : i32, i32
  }
  func.func @transform_6(%arg0: i32) -> (i32, i32) {
    %c0_i32 = arith.constant 0 : i32
    %c0_i32_0 = arith.constant 0 : i32
    %c0_i32_1 = arith.constant 0 : i32
    return %c0_i32, %c0_i32_0 : i32, i32
  }
  func.func @transform_7(%arg0: i32) -> (i32, i32) {
    %c0_i32 = arith.constant 0 : i32
    %c0_i32_0 = arith.constant 0 : i32
    return %arg0, %c0_i32 : i32, i32
  }
}

</mosaic_0001>

<bundles_post_ra>
// kernel: code_vectorizer_forward.1
= control target key start
LH: loop header
LB: loop body
LE: loop exit
PB: predicated region body
PF: predicated region fallthrough
CT: control target
= control target key end

     0   :  { %vm83_vm0 = vcmask 261120   ;;  %vm638_vm1 = vcmask 1041409   ;;  %vm640_vm2 = vcmask 1042434   ;;  %vm642_vm3 = vcmask 1043459   ;;  %s1013_s4 = inlined_call_operand.vmem [shape: bf16[32,128], index: 4, kind: input, shape index: {}]   ;;  %s1014_s3 = inlined_call_operand.vmem [shape: bf16[32,128], index: 3, kind: input, shape index: {}]   ;;  %s1015_s1 = inlined_call_operand.vmem [shape: bf16[64,32], index: 1, kind: input, shape index: {}]   ;;  %s1016_s0 = inlined_call_operand.vmem [shape: bf16[64,32], index: 0, kind: input, shape index: {}]   ;;  %s1017_s5 = inlined_call_operand.vmem [shape: bf16[32,128], index: 5, kind: input, shape index: {}]   ;;  %s1018_s2 = inlined_call_operand.vmem [shape: bf16[64,32], index: 2, kind: input, shape index: {}]   ;;  %s1019_s6 = inlined_call_operand.vmem [shape: f32[1,128], index: 6, kind: input, shape index: {}]   ;;  %s1020_s7 = inlined_call_operand.vmem [shape: f32[8,128], index: 7, kind: output, shape index: {}]  }
   0x1   :  { %v763_v0 = vld [vmem:[%s1013_s4] sm:$0xff]   ;;  %v765_v2 = vld [vmem:[%s1013_s4 + $0x8] sm:$0xff]   ;;  %v773_v10 = vld [vmem:[%s1015_s1 + $0x10] sm:$0xff]   ;;  %vm644_vm4 = vcmask 1044484   ;;  %vm646_vm5 = vcmask 1045509   ;;  %vm648_vm6 = vcmask 1046534  }
   0x2   :  { %v764_v1 = vld [vmem:[%s1014_s3] sm:$0xff]   ;;  %707 = vmatprep.subr.bf16.mxu1 %v763_v0  ;;  %v766_v3 = vld [vmem:[%s1014_s3 + $0x8] sm:$0xff]   ;;  %v774_v12 = vld [vmem:[%s1015_s1 + $0x18] sm:$0xff]   ;;  %vm650_vm7 = vcmask 1047559  }
   0x3   :  { %719 = vmatprep.subr.bf16.mxu0 %v764_v1  ;;  %708 = vmatpush3.bf16.msra.mxu1 %v763_v0  ;;  %v767_v4 = vld [vmem:[%s1015_s1] sm:$0xff]   ;;  %v769_v6 = vld [vmem:[%s1015_s1 + $0x8] sm:$0xff]   ;;  %v777_v13 = vld [vmem:[%s1016_s0 + $0x10] sm:$0xff]  }
   0x4   :  { %720 = vmatpush3.bf16.msra.mxu0 %v764_v1  ;;  %709 = vmatprep.subr.bf16.mxu1 %v765_v2  ;;  %v768_v5 = vld [vmem:[%s1016_s0] sm:$0xff]   ;;  %v770_v7 = vld [vmem:[%s1016_s0 + $0x8] sm:$0xff]   ;;  %v778_v15 = vld [vmem:[%s1018_s2 + $0x10] sm:$0xff]  }
   0x5   :  { %721 = vmatprep.subr.bf16.mxu0 %v766_v3  ;;  %711 = vmatprep.mubr.msk.bf16.mxu1 %vm83_vm0, %v767_v4  ;;  %v771_v8 = vld [vmem:[%s1017_s5] sm:$0xff]   ;;  %v772_v9 = vld [vmem:[%s1017_s5 + $0x8] sm:$0xff]   ;;  %v779_v16 = vld [vmem:[%s1016_s0 + $0x18] sm:$0xff]  }
   0x6   :  { %723 = vmatprep.mubr.msk.bf16.mxu0 %vm83_vm0, %v768_v5  ;;  %v775_v11 = vld [vmem:[%s1018_s2] sm:$0xff]   ;;  %v776_v14 = vld [vmem:[%s1018_s2 + $0x8] sm:$0xff]   ;;  %v780_v17 = vld [vmem:[%s1018_s2 + $0x18] sm:$0xff]  }
   0x7   :  { %710 = vmatpush3.bf16.msra.mxu1 %v765_v2  ;;  %v688_v41 = vld [vmem:[%s1019_s6] ss:$0 sm:$0xff] }
   0x8   :  { %722 = vmatpush3.bf16.msra.mxu0 %v766_v3  ;;  %743 = vmatprep.subr.bf16.mxu1 %v764_v1 }
   0x9   :  { %731 = vmatprep.subr.bf16.mxu0 %v771_v8 }
   0xa   :  { %712 = vmatmul.mubr.msk.bf16.vlgmr.msra.gmra.mrb[0].mxu1 %vm83_vm0, %v769_v6 }
   0xb   :  { %724 = vmatmul.mubr.msk.bf16.vlgmr.msra.gmra.mrb[0].mxu0 %vm83_vm0, %v770_v7  ;;  %745 = vmatpush3.bf16.msra.mxu1 %v764_v1 }
   0xc   :  { %732 = vmatpush3.bf16.msra.mxu0 %v771_v8  ;;  %715 = vmatprep.mubr.msk.bf16.mxu1 %vm83_vm0, %v773_v10 }
   0xd   :  { %733 = vmatprep.subr.bf16.mxu0 %v772_v9  ;;  %744 = vmatprep.subr.bf16.mxu1 %v766_v3 }
   0xe   :  { %735 = vmatprep.mubr.msk.bf16.mxu0 %vm83_vm0, %v775_v11 }
   0xf   :  { %746 = vmatpush3.bf16.msra.mxu1 %v766_v3 }
  0x10   :  { %734 = vmatpush3.bf16.msra.mxu0 %v772_v9 }
  0x12   :  { %716 = vmatmul.mubr.msk.bf16.gmra.mrb[4].mxu1 %vm83_vm0, %v774_v12 }
  0x13   :  { %727 = vmatprep.mubr.msk.bf16.mxu1 %vm83_vm0, %v777_v13 }
  0x17   :  { %736 = vmatmul.mubr.msk.bf16.vlgmr.msra.gmra.mrb[0].mxu0 %vm83_vm0, %v776_v14 }
  0x18   :  { %739 = vmatprep.mubr.msk.bf16.mxu0 %vm83_vm0, %v778_v15 }
  0x1e   :  { %728 = vmatmul.mubr.msk.bf16.vlgmr.msra.gmra.mrb[4].mxu1 %vm83_vm0, %v779_v16 }
  0x1f   :  { %740 = vmatmul.mubr.msk.bf16.gmra.mrb[4].mxu0 %vm83_vm0, %v780_v17 }
  0xdd   :  { %v713_v18 = vpop.f32.mrb[0].mxu1 }
  0xde   :  { %v130_v19 = vpop.f32.mrb[1].mxu1 }
  0xdf   :  { %v714_v20 = vpop.f32.mrb[2].mxu1 }
  0xe0   :  { %v133_v21 = vpop.f32.mrb[3].mxu1 }
  0xea   :  { %v737_v22 = vpop.f32.mrb[0].mxu0 }
  0xeb   :  { %v747_v23 = vadd.f32 %v737_v22, %v713_v18  ;;  %v360_v24 = vpop.f32.mrb[1].mxu0 }
  0xec   :  { %v748_v25 = vadd.f32 %v360_v24, %v130_v19  ;;  %v738_v26 = vpop.f32.mrb[2].mxu0 }
  0xed   :  { %781 = vtanh.f32 %v747_v23  ;;  %v749_v27 = vadd.f32 %v738_v26, %v714_v20  ;;  %v363_v28 = vpop.f32.mrb[3].mxu0 }
  0xee   :  { %783 = vtanh.f32 %v748_v25  ;;  %v750_v29 = vadd.f32 %v363_v28, %v133_v21 }
  0xef   :  { %785 = vtanh.f32 %v749_v27 }
  0xf0   :  { %787 = vtanh.f32 %v750_v29 }
  0xf1   :  { %v729_v30 = vpop.f32.mrb[4].mxu1 }
  0xf2   :  { %v741_v31 = vpop.f32.mrb[4].mxu0  ;;  %v255_v32 = vpop.f32.mrb[5].mxu1 }
  0xf3   :  { %v751_v33 = vadd.f32 %v741_v31, %v729_v30  ;;  %v376_v34 = vpop.f32.mrb[5].mxu0  ;;  %v730_v35 = vpop.f32.mrb[6].mxu1 }
  0xf4   :  { %v752_v36 = vadd.f32 %v376_v34, %v255_v32  ;;  %v742_v37 = vpop.f32.mrb[6].mxu0  ;;  %v258_v38 = vpop.f32.mrb[7].mxu1 }
  0xf5   :  { %v753_v39 = vadd.f32 %v742_v37, %v730_v35  ;;  %v379_v40 = vpop.f32.mrb[7].mxu0 }
  0xf6   :  { %789 = vtanh.f32 %v752_v36  ;;  %v754_v42 = vadd.f32 %v379_v40, %v258_v38 }
  0xf7   :  { %v938_v43 = vpop.eup %781  ;;  %791 = vtanh.f32 %v751_v33 }
  0xf8   :  { %v940_v44 = vpop.eup %783  ;;  %793 = vtanh.f32 %v754_v42  ;;  %v416_v45 = vmul.f32 %v938_v43, %v688_v41 }
  0xf9   :  { %v943_v46 = vpop.eup %785  ;;  %v414_v47 = vmul.f32 %v940_v44, %v688_v41  ;;  %795 = vtanh.f32 %v753_v39 }
  0xfa   :  { %v946_v48 = vpop.eup %787  ;;  %426 = vadd.xlane.f32.xlu1 %v416_v45  ;;  %v417_v49 = vmul.f32 %v943_v46, %v688_v41 }
  0xfb   :  { %422 = vadd.xlane.f32.xlu0 %v414_v47  ;;  %v415_v50 = vmul.f32 %v946_v48, %v688_v41 }
  0xfe   :  { %428 = vadd.xlane.f32.xlu1 %v417_v49 }
  0xff   :  { %424 = vadd.xlane.f32.xlu0 %v415_v50 }
 0x100   :  { %v950_v51 = vpop.eup %789 }
 0x101   :  { %v952_v52 = vpop.eup %791  ;;  %v418_v53 = vmul.f32 %v950_v51, %v688_v41 }
 0x102   :  { %v955_v54 = vpop.eup %793  ;;  %v420_v57 = vmul.f32 %v952_v52, %v688_v41 }
 0x103   :  { %430 = vadd.xlane.f32.xlu0 %v418_v53  ;;  %v419_v55 = vmul.f32 %v955_v54, %v688_v41  ;;  %v958_v56 = vpop.eup %795 }
 0x104   :  { %v421_v58 = vmul.f32 %v958_v56, %v688_v41 }
 0x105   :  { %432 = vadd.xlane.f32.xlu1 %v419_v55 }
 0x107   :  { %434 = vadd.xlane.f32.xlu0 %v420_v57 }
 0x109   :  { %436 = vadd.xlane.f32.xlu1 %v421_v58 }
 0x187   :  { %v427_v59 = vpop.xlane.xlu1 %426 }
 0x188   :  { %v450_v60 = vrot.slane %v427_v59, 4  ;;  %v423_v61 = vpop.xlane.xlu0 %422 }
 0x189   :  { %v438_v62 = vrot.slane %v423_v61, 4 }
 0x18a   :  { %v451_v63 = vmax.f32 %v427_v59, %v450_v60 }
 0x18b   :  { %v439_v0 = vmax.f32 %v423_v61, %v438_v62  ;;  %v429_v1 = vpop.xlane.xlu1 %428 }
 0x18c   :  { %v452_v2 = vrot.slane %v451_v63, 2  ;;  %v456_v3 = vrot.slane %v429_v1, 4  ;;  %v425_v4 = vpop.xlane.xlu0 %424 }
 0x18d   :  { %v440_v5 = vrot.slane %v439_v0, 2  ;;  %v444_v6 = vrot.slane %v425_v4, 4 }
 0x18e   :  { %v453_v7 = vmax.f32 %v451_v63, %v452_v2  ;;  %v457_v8 = vmax.f32 %v429_v1, %v456_v3 }
 0x18f   :  { %v441_v9 = vmax.f32 %v439_v0, %v440_v5  ;;  %v445_v10 = vmax.f32 %v425_v4, %v444_v6 }
 0x190   :  { %v454_v11 = vrot.slane %v453_v7, 1  ;;  %v458_v12 = vrot.slane %v457_v8, 2  ;;  %v431_v13 = vpop.xlane.xlu0 %430 }
 0x191   :  { %v442_v14 = vrot.slane %v441_v9, 1  ;;  %v446_v15 = vrot.slane %v445_v10, 2  ;;  %v462_v16 = vrot.slane %v431_v13, 4 }
 0x192   :  { %v455_v17 = vmax.f32 %v453_v7, %v454_v11  ;;  %v459_v18 = vmax.f32 %v457_v8, %v458_v12  ;;  %v433_v19 = vpop.xlane.xlu1 %432 }
 0x193   :  { %v443_v20 = vmax.f32 %v441_v9, %v442_v14  ;;  %v447_v21 = vmax.f32 %v445_v10, %v446_v15  ;;  %v463_v22 = vmax.f32 %v431_v13, %v462_v16  ;;  %v468_v23 = vrot.slane %v433_v19, 4 }
 0x194   :  { %v488_v24 = vsub.f32 %v427_v59, %v455_v17  ;;  %v460_v25 = vrot.slane %v459_v18, 1  ;;  %v435_v26 = vpop.xlane.xlu0 %434 }
 0x195   :  { %v486_v27 = vsub.f32 %v423_v61, %v443_v20  ;;  %v448_v28 = vrot.slane %v447_v21, 1  ;;  %v464_v29 = vrot.slane %v463_v22, 2  ;;  %v469_v30 = vmax.f32 %v433_v19, %v468_v23 }
 0x196   :  { %v498_v31 = vmul.f32 1.442695, %v488_v24  ;;  %v461_v32 = vmax.f32 %v459_v18, %v460_v25  ;;  %v474_v33 = vrot.slane %v435_v26, 4  ;;  %v437_v34 = vpop.xlane.xlu1 %436 }
 0x197   :  { %v494_v35 = vmul.f32 1.442695, %v486_v27  ;;  %v449_v36 = vmax.f32 %v447_v21, %v448_v28  ;;  %v465_v37 = vmax.f32 %v463_v22, %v464_v29  ;;  %v470_v38 = vrot.slane %v469_v30, 2 }
 0x198   :  { %797 = vpow2.f32 %v498_v31  ;;  %v489_v39 = vsub.f32 %v429_v1, %v461_v32  ;;  %v475_v40 = vmax.f32 %v435_v26, %v474_v33  ;;  %v480_v41 = vrot.slane %v437_v34, 4 }
 0x199   :  { %799 = vpow2.f32 %v494_v35  ;;  %v487_v42 = vsub.f32 %v425_v4, %v449_v36  ;;  %v466_v45 = vrot.slane %v465_v37, 1  ;;  %v471_v47 = vmax.f32 %v469_v30, %v470_v38 }
 0x19a   :  { %v500_v49 = vmul.f32 1.442695, %v489_v39  ;;  %v476_v50 = vrot.slane %v475_v40, 2  ;;  %v481_v53 = vmax.f32 %v437_v34, %v480_v41 }
 0x19b   :  { %v496_v55 = vmul.f32 1.442695, %v487_v42  ;;  %v467_v57 = vmax.f32 %v465_v37, %v466_v45  ;;  %v472_v58 = vrot.slane %v471_v47, 1 }
 0x19c   :  { %801 = vpow2.f32 %v500_v49  ;;  %v477_v59 = vmax.f32 %v475_v40, %v476_v50  ;;  %v482_v60 = vrot.slane %v481_v53, 2 }
 0x19d   :  { %803 = vpow2.f32 %v496_v55  ;;  %v490_v61 = vsub.f32 %v431_v13, %v467_v57  ;;  %v473_v62 = vmax.f32 %v471_v47, %v472_v58 }
 0x19e   :  { %v478_v63 = vrot.slane %v477_v59, 1  ;;  %v483_v0 = vmax.f32 %v481_v53, %v482_v60 }
 0x19f   :  { %v502_v1 = vmul.f32 1.442695, %v490_v61  ;;  %v491_v2 = vsub.f32 %v433_v19, %v473_v62 }
 0x1a0   :  { %v479_v3 = vmax.f32 %v477_v59, %v478_v63  ;;  %v484_v4 = vrot.slane %v483_v0, 1 }
 0x1a1   :  { %805 = vpow2.f32 %v502_v1  ;;  %v504_v5 = vmul.f32 1.442695, %v491_v2 }
 0x1a2   :  { %v962_v6 = vpop.eup %797  ;;  %v492_v7 = vsub.f32 %v435_v26, %v479_v3  ;;  %v485_v8 = vmax.f32 %v483_v0, %v484_v4 }
 0x1a3   :  { %v964_v9 = vpop.eup %799  ;;  %v522_v10 = vrot.slane %v962_v6, 4  ;;  %807 = vpow2.f32 %v504_v5 }
 0x1a4   :  { %v510_v11 = vrot.slane %v964_v9, 4  ;;  %v506_v12 = vmul.f32 1.442695, %v492_v7  ;;  %v493_v13 = vsub.f32 %v437_v34, %v485_v8 }
 0x1a5   :  { %v523_v14 = vadd.f32 %v962_v6, %v522_v10 }
 0x1a6   :  { %v969_v15 = vpop.eup %801  ;;  %v511_v16 = vadd.f32 %v964_v9, %v510_v11  ;;  %809 = vpow2.f32 %v506_v12  ;;  %v508_v17 = vmul.f32 1.442695, %v493_v13 }
 0x1a7   :  { %v972_v18 = vpop.eup %803  ;;  %v524_v19 = vrot.slane %v523_v14, 2  ;;  %v528_v20 = vrot.slane %v969_v15, 4 }
 0x1a8   :  { %v512_v21 = vrot.slane %v511_v16, 2  ;;  %v516_v22 = vrot.slane %v972_v18, 4  ;;  %811 = vpow2.f32 %v508_v17 }
 0x1a9   :  { %v525_v23 = vadd.f32 %v524_v19, %v523_v14  ;;  %v529_v24 = vadd.f32 %v969_v15, %v528_v20 }
 0x1aa   :  { %v513_v25 = vadd.f32 %v512_v21, %v511_v16  ;;  %v517_v26 = vadd.f32 %v972_v18, %v516_v22 }
 0x1ab   :  { %v978_v27 = vpop.eup %805  ;;  %v526_v28 = vrot.slane %v525_v23, 1  ;;  %v530_v29 = vrot.slane %v529_v24, 2 }
 0x1ac   :  { %v514_v30 = vrot.slane %v513_v25, 1  ;;  %v518_v31 = vrot.slane %v517_v26, 2  ;;  %v534_v32 = vrot.slane %v978_v27, 4 }
 0x1ad   :  { %v981_v33 = vpop.eup %807  ;;  %v527_v34 = vadd.f32 %v526_v28, %v525_v23  ;;  %v531_v35 = vadd.f32 %v530_v29, %v529_v24 }
 0x1ae   :  { %v515_v36 = vadd.f32 %v514_v30, %v513_v25  ;;  %v519_v37 = vadd.f32 %v518_v31, %v517_v26  ;;  %v535_v38 = vadd.f32 %v978_v27, %v534_v32  ;;  %v540_v39 = vrot.slane %v981_v33, 4 }
 0x1af   :  { %813 = vrcp.f32 %v527_v34  ;;  %v532_v40 = vrot.slane %v531_v35, 1 }
 0x1b0   :  { %v985_v41 = vpop.eup %809  ;;  %815 = vrcp.f32 %v515_v36  ;;  %v520_v42 = vrot.slane %v519_v37, 1  ;;  %v536_v45 = vrot.slane %v535_v38, 2  ;;  %v541_v47 = vadd.f32 %v981_v33, %v540_v39 }
 0x1b1   :  { %v533_v49 = vadd.f32 %v532_v40, %v531_v35  ;;  %v546_v50 = vrot.slane %v985_v41, 4 }
 0x1b2   :  { %v989_v53 = vpop.eup %811  ;;  %v521_v55 = vadd.f32 %v520_v42, %v519_v37  ;;  %v537_v57 = vadd.f32 %v536_v45, %v535_v38  ;;  %v542_v58 = vrot.slane %v541_v47, 2 }
 0x1b3   :  { %817 = vrcp.f32 %v533_v49  ;;  %v547_v59 = vadd.f32 %v985_v41, %v546_v50  ;;  %v552_v60 = vrot.slane %v989_v53, 4 }
 0x1b4   :  { %819 = vrcp.f32 %v521_v55  ;;  %v538_v61 = vrot.slane %v537_v57, 1  ;;  %v543_v62 = vadd.f32 %v542_v58, %v541_v47 }
 0x1b5   :  { %v548_v63 = vrot.slane %v547_v59, 2  ;;  %v553_v0 = vadd.f32 %v989_v53, %v552_v60 }
 0x1b6   :  { %v539_v1 = vadd.f32 %v538_v61, %v537_v57  ;;  %v544_v2 = vrot.slane %v543_v62, 1 }
 0x1b7   :  { %v549_v3 = vadd.f32 %v548_v63, %v547_v59  ;;  %v554_v4 = vrot.slane %v553_v0, 2 }
 0x1b8   :  { %821 = vrcp.f32 %v539_v1  ;;  %v545_v5 = vadd.f32 %v544_v2, %v543_v62 }
 0x1b9   :  { %v814_v7 = vpop.eup %813  ;;  %v550_v8 = vrot.slane %v549_v3, 1  ;;  %v555_v10 = vadd.f32 %v554_v4, %v553_v0 }
 0x1ba   :  { %v816_v11 = vpop.eup %815  ;;  %v568_v12 = vmul.f32 %v814_v7, %v962_v6  ;;  %823 = vrcp.f32 %v545_v5 }
 0x1bb   :  { %v566_v13 = vmul.f32 %v816_v11, %v964_v9  ;;  %v551_v14 = vadd.f32 %v550_v8, %v549_v3  ;;  %v556_v16 = vrot.slane %v555_v10, 1 }
 0x1bc   :  { %v576_v17 = vmul.f32 %v938_v43, %v568_v12 }
 0x1bd   :  { %v818_v19 = vpop.eup %817  ;;  %v574_v20 = vmul.f32 %v940_v44, %v566_v13  ;;  %825 = vrcp.f32 %v551_v14  ;;  %v557_v21 = vadd.f32 %v556_v16, %v555_v10 }
 0x1be   :  { %v820_v22 = vpop.eup %819  ;;  %v594_v23 = vrot.slane %v576_v17, 4  ;;  %v569_v24 = vmul.f32 %v818_v19, %v969_v15 }
 0x1bf   :  { %v582_v25 = vrot.slane %v574_v20, 4  ;;  %v567_v26 = vmul.f32 %v820_v22, %v972_v18  ;;  %827 = vrcp.f32 %v557_v21 }
 0x1c0   :  { %v595_v6 = vadd.f32 %v594_v23, %v576_v17  ;;  %v577_v9 = vmul.f32 %v943_v46, %v569_v24 }
 0x1c1   :  { %v583_v28 = vadd.f32 %v582_v25, %v574_v20  ;;  %v575_v29 = vmul.f32 %v946_v48, %v567_v26 }
 0x1c2   :  { %v822_v43 = vpop.eup %821  ;;  %v596_v30 = vrot.slane %v595_v6, 2  ;;  %v600_v31 = vrot.slane %v577_v9, 4 }
 0x1c3   :  { %v584_v44 = vrot.slane %v583_v28, 2  ;;  %v588_v32 = vrot.slane %v575_v29, 4  ;;  %v570_v34 = vmul.f32 %v822_v43, %v978_v27 }
 0x1c4   :  { %v824_v35 = vpop.eup %823  ;;  %v601_v36 = vadd.f32 %v600_v31, %v577_v9  ;;  %v597_v39 = vadd.f32 %v596_v30, %v595_v6 }
 0x1c5   :  { %v585_v15 = vadd.f32 %v584_v44, %v583_v28  ;;  %v589_v37 = vadd.f32 %v588_v32, %v575_v29  ;;  %v578_v18 = vmul.f32 %v950_v51, %v570_v34  ;;  %v571_v38 = vmul.f32 %v824_v35, %v981_v33 }
 0x1c6   :  { %v602_v46 = vrot.slane %v601_v36, 2  ;;  %v598_v59 = vrot.slane %v597_v39, 1 }
 0x1c7   :  { %v826_v40 = vpop.eup %825  ;;  %v590_v42 = vrot.slane %v589_v37, 2  ;;  %v606_v48 = vrot.slane %v578_v18, 4  ;;  %v579_v45 = vmul.f32 %v955_v54, %v571_v38  ;;  %v586_v27 = vrot.slane %v585_v15, 1 }
 0x1c8   :  { %v603_v47 = vadd.f32 %v602_v46, %v601_v36  ;;  %v572_v49 = vmul.f32 %v826_v40, %v985_v41  ;;  %v599_v4 = vadd.f32 %v598_v59, %v597_v39 }
 0x1c9   :  { %v828_v50 = vpop.eup %827  ;;  %v591_v55 = vadd.f32 %v590_v42, %v589_v37  ;;  %v607_v57 = vadd.f32 %v606_v48, %v578_v18  ;;  %v612_v58 = vrot.slane %v579_v45, 4  ;;  %v587_v41 = vadd.f32 %v586_v27, %v585_v15 }
 0x1ca   :  { %v580_v51 = vmul.f32 %v952_v52, %v572_v49  ;;  %v573_v33 = vmul.f32 %v828_v50, %v989_v53  ;;  %v604_v60 = vrot.slane %v603_v47, 1 }
 0x1cb   :  { %v592_v61 = vrot.slane %v591_v55, 1  ;;  %v608_v62 = vrot.slane %v607_v57, 2  ;;  %v613_v63 = vadd.f32 %v612_v58, %v579_v45 }
 0x1cc   :  { %v618_v54 = vrot.slane %v580_v51, 4  ;;  %v581_v0 = vmul.f32 %v958_v56, %v573_v33  ;;  %v605_v52 = vadd.f32 %v604_v60, %v603_v47 }
 0x1cd   :  { %v593_v1 = vadd.f32 %v592_v61, %v591_v55  ;;  %v609_v2 = vadd.f32 %v608_v62, %v607_v57  ;;  %v614_v3 = vrot.slane %v613_v63, 2 }
 0x1ce   :  { %v619_v5 = vadd.f32 %v618_v54, %v580_v51  ;;  %v624_v7 = vrot.slane %v581_v0, 4 }
 0x1cf   :  { %v639_v8 = vsel %vm638_vm1, %v593_v1, %v587_v41  ;;  %v610_v53 = vrot.slane %v609_v2, 1  ;;  %v615_v10 = vadd.f32 %v614_v3, %v613_v63 }
 0x1d0   :  { %v641_v11 = vsel %vm640_vm2, %v599_v4, %v639_v8  ;;  %v620_v12 = vrot.slane %v619_v5, 2  ;;  %v625_v13 = vadd.f32 %v624_v7, %v581_v0 }
 0x1d1   :  { %v643_v14 = vsel %vm642_vm3, %v605_v52, %v641_v11  ;;  %v611_v16 = vadd.f32 %v610_v53, %v609_v2  ;;  %v616_v17 = vrot.slane %v615_v10, 1 }
 0x1d2   :  { %v621_v56 = vadd.f32 %v620_v12, %v619_v5  ;;  %v626_v19 = vrot.slane %v625_v13, 2 }
 0x1d3   :  { %v645_v20 = vsel %vm644_vm4, %v611_v16, %v643_v14  ;;  %v617_v21 = vadd.f32 %v616_v17, %v615_v10 }
 0x1d4   :  { %v622_v22 = vrot.slane %v621_v56, 1  ;;  %v627_v23 = vadd.f32 %v626_v19, %v625_v13 }
 0x1d5   :  { %v647_v24 = vsel %vm646_vm5, %v617_v21, %v645_v20 }
 0x1d6   :  { %v623_v25 = vadd.f32 %v622_v22, %v621_v56  ;;  %v628_v26 = vrot.slane %v627_v23, 1 }
 0x1d8   :  { %v649_v6 = vsel %vm648_vm6, %v623_v25, %v647_v24  ;;  %v629_v9 = vadd.f32 %v628_v26, %v627_v23 }
 0x1da   :  { %v651_v28 = vsel %vm650_vm7, %v629_v9, %v649_v6 }
 0x1db   :  { %653 = vst [vmem:[%s1020_s7] sm:$0xff] %v651_v28 }

</bundles_post_ra>
